<compile_context>
chip_gen: v6e
topology: v6e:2x2x1
jax: 0.10.0
libtpu: 0.0.40
codegen_flags: <defaults>
</compile_context>

<pallas_src>
import functools

import jax
import jax.numpy as jnp
from jax import lax
from jax.experimental import pallas as pl
from jax.experimental.pallas import tpu as pltpu


def _flat_cummax(x, idx, seg_len, unit, reverse):
    """Directional running max over segments laid out along the flat lane axis.

    x       : (C, H*W) block.  Each scanned segment has `seg_len` elements
              spaced `unit` apart in the flat axis (unit=1 -> scan over W,
              unit=W -> scan over H).
    idx     : int32 (1, H*W) position key: within-row index (for W scans) or
              flat pixel index (for H scans).
    reverse : False = prefix max (top/left), True = suffix max (bottom/right).

    Hillis-Steele doubling scan: log2(seg_len) steps of roll (XLU) +
    compare/select + max (VPU).  Elements that would wrap across a segment
    boundary are masked out, so no -inf sentinel is required.
    """
    hw = x.shape[-1]
    shift = 1
    while shift < seg_len:
        amt = shift * unit
        if not reverse:
            rolled = pltpu.roll(x, amt, axis=1)            # x[p - amt] (wrapped)
            x = jnp.where(idx >= amt, jnp.maximum(x, rolled), x)
        else:
            rolled = pltpu.roll(x, hw - amt, axis=1)       # x[p + amt] (wrapped)
            x = jnp.where(idx < (seg_len - shift) * unit, jnp.maximum(x, rolled), x)
        shift *= 2
    return x


def _boundary_activation_kernel(x_ref, w_ref, b_ref, col_ref, o_ref, *, H, W):
    # x_ref  : (1, C, H*W)  one image; channels on sublanes, pixels on lanes
    # w_ref  : (5, C, C)    1x1-conv weight pre-split into the 5 concat groups
    # b_ref  : (C, 1)       bias (f32)
    # col_ref: (1, H*W)     within-row (w) index of each pixel, int32
    # o_ref  : (1, C, H*W)
    x = x_ref[0]                                    # (C, HW)
    C, HW = x.shape

    pos = lax.broadcasted_iota(jnp.int32, (1, HW), 1)   # flat pixel index
    col = col_ref[...]                                   # pixel's w index

    x1 = _flat_cummax(x, pos, H, W, reverse=False)   # up    -> bottom (cummax over H)
    x2 = _flat_cummax(x, pos, H, W, reverse=True)    # bottom -> up
    x3 = _flat_cummax(x, col, W, 1, reverse=False)   # left  -> right  (cummax over W)
    x4 = _flat_cummax(x, col, W, 1, reverse=True)    # right -> left

    # 1x1 conv over the *virtual* concat [x, x1, x2, x3, x4]:
    #   out[o, p] = b[o] + sum_k sum_c w5[k, o, c] * xk[c, p]
    # done as 5 accumulated MXU matmuls -- no 5C concat buffer is materialized.
    acc = jnp.dot(w_ref[0], x, preferred_element_type=jnp.float32)
    for k, xk in enumerate((x1, x2, x3, x4), start=1):
        acc = acc + jnp.dot(w_ref[k], xk, preferred_element_type=jnp.float32)
    acc = acc + b_ref[...]                           # (C, 1) broadcast over lanes

    o_ref[0] = acc.astype(o_ref.dtype)               # lane-dense (C, H*W) store


def boundary_activation(x_nchw, weight, bias):
    """x_nchw: (B, C, H, W); weight: (C, 5C, 1, 1); bias: (C,). Returns (B, C, H, W)."""
    B, C, H, W = x_nchw.shape
    HW = H * W

    # Free row-major reshape: (B, C, H, W) -> (B, C, H*W); no data movement.
    x_flat = x_nchw.reshape(B, C, HW)
    # Pre-split the 1x1 conv weight into its 5 input-channel groups: (5, C_out, C_in).
    w5 = weight[:, :, 0, 0].reshape(C, 5, C).transpose(1, 0, 2)
    b2 = bias.reshape(C, 1).astype(jnp.float32)
    # Within-row pixel index, precomputed so the kernel needs no integer div/mod.
    col = (jnp.arange(HW, dtype=jnp.int32) % W).reshape(1, HW)

    # TODO(synk): for very large images on v7x (64 MiB VMEM), add an H-tile grid
    # axis with a carried running-max scratch for the H scans (forward pass +
    # reversed second pass) instead of one whole-image block per batch element.
    block_bytes = C * HW * jnp.dtype(x_nchw.dtype).itemsize
    vmem_limit = int(min(48 * 1024 * 1024, max(32 * 1024 * 1024, 16 * block_bytes)))

    out_flat = pl.pallas_call(
        functools.partial(_boundary_activation_kernel, H=H, W=W),
        out_shape=jax.ShapeDtypeStruct((B, C, HW), x_nchw.dtype),
        grid_spec=pltpu.PrefetchScalarGridSpec(
            num_scalar_prefetch=0,
            grid=(B,),
            in_specs=[
                pl.BlockSpec((1, C, HW), lambda b: (b, 0, 0)),
                pl.BlockSpec((5, C, C), lambda b: (0, 0, 0)),
                pl.BlockSpec((C, 1), lambda b: (0, 0)),
                pl.BlockSpec((1, HW), lambda b: (0, 0)),
            ],
            out_specs=pl.BlockSpec((1, C, HW), lambda b: (b, 0, 0)),
        ),
        compiler_params=pltpu.CompilerParams(
            dimension_semantics=("parallel",),
            vmem_limit_bytes=vmem_limit,
        ),
    )(x_flat, w5, b2, col)

    return out_flat.reshape(B, C, H, W)


def reference(x_nchw, weight, bias):
    """Pure-JAX reference (NCHW, mirrors the PyTorch module exactly)."""
    x = x_nchw
    x1 = lax.cummax(x, axis=2)
    x2 = lax.cummax(x, axis=2, reverse=True)
    x3 = lax.cummax(x, axis=3)
    x4 = lax.cummax(x, axis=3, reverse=True)
    xc = jnp.concatenate([x, x1, x2, x3, x4], axis=1)            # (B, 5C, H, W)
    w = weight[:, :, 0, 0]                                       # (C, 5C)
    out = jnp.einsum("bihw,oi->bohw", xc, w) + bias[None, :, None, None]
    return out


if __name__ == "__main__":
    B, C, H, W = 2, 4, 16, 16
    key = jax.random.PRNGKey(0)
    kx, kw, kb = jax.random.split(key, 3)

    x = jax.random.normal(kx, (B, C, H, W), dtype=jnp.float32)
    # Conv2d(in=5C, out=C, k=1) parameters, deterministic init.
    weight = jax.random.normal(kw, (C, 5 * C, 1, 1), dtype=jnp.float32) * 0.1
    bias = jax.random.normal(kb, (C,), dtype=jnp.float32) * 0.1

    out = boundary_activation(x, weight, bias)
    out = jax.block_until_ready(out)

    ref = jax.block_until_ready(reference(x, weight, bias))
    assert out.shape == (B, C, H, W)
    assert jnp.allclose(out, ref, atol=1e-4, rtol=1e-4), "mismatch vs reference"
    print("KERNEL_OK")
</pallas_src>

<mosaic_0001>
module attributes {stable_mosaic.version = 11 : i64} {
  func.func @_boundary_activation_kernel(%arg0: i32, %arg1: memref<1x4x256xf32, #tpu.memory_space<vmem>>, %arg2: memref<5x4x4xf32, #tpu.memory_space<vmem>>, %arg3: memref<4x1xf32, #tpu.memory_space<vmem>>, %arg4: memref<1x256xi32, #tpu.memory_space<vmem>>, %arg5: memref<1x4x256xf32, #tpu.memory_space<vmem>>) attributes {dimension_semantics = [#tpu.dimension_semantics<parallel>], iteration_bounds = array<i64: 2>, scalar_prefetch = 0 : i64, scratch_operands = 0 : i64, tpu.core_type = #tpu.core_type<tc>, window_params = [{transform_indices = @transform_0, window_bounds = array<i64: 1, 4, 256>}, {pipeline_mode = #tpu.pipeline_mode<synchronous>, transform_indices = @transform_1, window_bounds = array<i64: 5, 4, 4>}, {pipeline_mode = #tpu.pipeline_mode<synchronous>, transform_indices = @transform_2, window_bounds = array<i64: 4, 1>}, {pipeline_mode = #tpu.pipeline_mode<synchronous>, transform_indices = @transform_3, window_bounds = array<i64: 1, 256>}, {transform_indices = @transform_4, window_bounds = array<i64: 1, 4, 256>}]} {
    %c0 = arith.constant 0 : index
    %c0_0 = arith.constant 0 : index
    %c0_1 = arith.constant 0 : index
    %0 = vector.load %arg1[%c0, %c0_0, %c0_1] : memref<1x4x256xf32, #tpu.memory_space<vmem>>, vector<1x4x256xf32>
    %1 = vector.shape_cast %0 : vector<1x4x256xf32> to vector<4x256xf32>
    %2 = tpu.iota {dimensions = array<i32: 1>} : vector<1x256xi32>
    %c0_2 = arith.constant 0 : index
    %c0_3 = arith.constant 0 : index
    %3 = vector.load %arg4[%c0_2, %c0_3] : memref<1x256xi32, #tpu.memory_space<vmem>>, vector<1x256xi32>
    %c16_i32 = arith.constant 16 : i32
    %4 = tpu.dynamic_rotate %1 by %c16_i32 dim 1 : vector<4x256xf32>, i32 -> vector<4x256xf32>
    %c16_i32_4 = arith.constant 16 : i32
    %5 = vector.broadcast %c16_i32_4 : i32 to vector<1x256xi32>
    %6 = arith.cmpi sge, %2, %5 : vector<1x256xi32>
    %7 = arith.maximumf %1, %4 : vector<4x256xf32>
    %8 = vector.shape_cast %6 : vector<1x256xi1> to vector<1x256xi1>
    %9 = vector.broadcast %8 : vector<1x256xi1> to vector<4x256xi1>
    %10 = arith.select %9, %7, %1 : vector<4x256xi1>, vector<4x256xf32>
    %c32_i32 = arith.constant 32 : i32
    %11 = tpu.dynamic_rotate %10 by %c32_i32 dim 1 : vector<4x256xf32>, i32 -> vector<4x256xf32>
    %c32_i32_5 = arith.constant 32 : i32
    %12 = vector.broadcast %c32_i32_5 : i32 to vector<1x256xi32>
    %13 = arith.cmpi sge, %2, %12 : vector<1x256xi32>
    %14 = arith.maximumf %10, %11 : vector<4x256xf32>
    %15 = vector.shape_cast %13 : vector<1x256xi1> to vector<1x256xi1>
    %16 = vector.broadcast %15 : vector<1x256xi1> to vector<4x256xi1>
    %17 = arith.select %16, %14, %10 : vector<4x256xi1>, vector<4x256xf32>
    %c64_i32 = arith.constant 64 : i32
    %18 = tpu.dynamic_rotate %17 by %c64_i32 dim 1 : vector<4x256xf32>, i32 -> vector<4x256xf32>
    %c64_i32_6 = arith.constant 64 : i32
    %19 = vector.broadcast %c64_i32_6 : i32 to vector<1x256xi32>
    %20 = arith.cmpi sge, %2, %19 : vector<1x256xi32>
    %21 = arith.maximumf %17, %18 : vector<4x256xf32>
    %22 = vector.shape_cast %20 : vector<1x256xi1> to vector<1x256xi1>
    %23 = vector.broadcast %22 : vector<1x256xi1> to vector<4x256xi1>
    %24 = arith.select %23, %21, %17 : vector<4x256xi1>, vector<4x256xf32>
    %c128_i32 = arith.constant 128 : i32
    %25 = tpu.dynamic_rotate %24 by %c128_i32 dim 1 : vector<4x256xf32>, i32 -> vector<4x256xf32>
    %c128_i32_7 = arith.constant 128 : i32
    %26 = vector.broadcast %c128_i32_7 : i32 to vector<1x256xi32>
    %27 = arith.cmpi sge, %2, %26 : vector<1x256xi32>
    %28 = arith.maximumf %24, %25 : vector<4x256xf32>
    %29 = vector.shape_cast %27 : vector<1x256xi1> to vector<1x256xi1>
    %30 = vector.broadcast %29 : vector<1x256xi1> to vector<4x256xi1>
    %31 = arith.select %30, %28, %24 : vector<4x256xi1>, vector<4x256xf32>
    %c240_i32 = arith.constant 240 : i32
    %32 = tpu.dynamic_rotate %1 by %c240_i32 dim 1 : vector<4x256xf32>, i32 -> vector<4x256xf32>
    %c240_i32_8 = arith.constant 240 : i32
    %33 = vector.broadcast %c240_i32_8 : i32 to vector<1x256xi32>
    %34 = arith.cmpi slt, %2, %33 : vector<1x256xi32>
    %35 = arith.maximumf %1, %32 : vector<4x256xf32>
    %36 = vector.shape_cast %34 : vector<1x256xi1> to vector<1x256xi1>
    %37 = vector.broadcast %36 : vector<1x256xi1> to vector<4x256xi1>
    %38 = arith.select %37, %35, %1 : vector<4x256xi1>, vector<4x256xf32>
    %c224_i32 = arith.constant 224 : i32
    %39 = tpu.dynamic_rotate %38 by %c224_i32 dim 1 : vector<4x256xf32>, i32 -> vector<4x256xf32>
    %c224_i32_9 = arith.constant 224 : i32
    %40 = vector.broadcast %c224_i32_9 : i32 to vector<1x256xi32>
    %41 = arith.cmpi slt, %2, %40 : vector<1x256xi32>
    %42 = arith.maximumf %38, %39 : vector<4x256xf32>
    %43 = vector.shape_cast %41 : vector<1x256xi1> to vector<1x256xi1>
    %44 = vector.broadcast %43 : vector<1x256xi1> to vector<4x256xi1>
    %45 = arith.select %44, %42, %38 : vector<4x256xi1>, vector<4x256xf32>
    %c192_i32 = arith.constant 192 : i32
    %46 = tpu.dynamic_rotate %45 by %c192_i32 dim 1 : vector<4x256xf32>, i32 -> vector<4x256xf32>
    %c192_i32_10 = arith.constant 192 : i32
    %47 = vector.broadcast %c192_i32_10 : i32 to vector<1x256xi32>
    %48 = arith.cmpi slt, %2, %47 : vector<1x256xi32>
    %49 = arith.maximumf %45, %46 : vector<4x256xf32>
    %50 = vector.shape_cast %48 : vector<1x256xi1> to vector<1x256xi1>
    %51 = vector.broadcast %50 : vector<1x256xi1> to vector<4x256xi1>
    %52 = arith.select %51, %49, %45 : vector<4x256xi1>, vector<4x256xf32>
    %c128_i32_11 = arith.constant 128 : i32
    %53 = tpu.dynamic_rotate %52 by %c128_i32_11 dim 1 : vector<4x256xf32>, i32 -> vector<4x256xf32>
    %c128_i32_12 = arith.constant 128 : i32
    %54 = vector.broadcast %c128_i32_12 : i32 to vector<1x256xi32>
    %55 = arith.cmpi slt, %2, %54 : vector<1x256xi32>
    %56 = arith.maximumf %52, %53 : vector<4x256xf32>
    %57 = vector.shape_cast %55 : vector<1x256xi1> to vector<1x256xi1>
    %58 = vector.broadcast %57 : vector<1x256xi1> to vector<4x256xi1>
    %59 = arith.select %58, %56, %52 : vector<4x256xi1>, vector<4x256xf32>
    %c1_i32 = arith.constant 1 : i32
    %60 = tpu.dynamic_rotate %1 by %c1_i32 dim 1 : vector<4x256xf32>, i32 -> vector<4x256xf32>
    %c1_i32_13 = arith.constant 1 : i32
    %61 = vector.broadcast %c1_i32_13 : i32 to vector<1x256xi32>
    %62 = arith.cmpi sge, %3, %61 : vector<1x256xi32>
    %63 = arith.maximumf %1, %60 : vector<4x256xf32>
    %64 = vector.shape_cast %62 : vector<1x256xi1> to vector<1x256xi1>
    %65 = vector.broadcast %64 : vector<1x256xi1> to vector<4x256xi1>
    %66 = arith.select %65, %63, %1 : vector<4x256xi1>, vector<4x256xf32>
    %c2_i32 = arith.constant 2 : i32
    %67 = tpu.dynamic_rotate %66 by %c2_i32 dim 1 : vector<4x256xf32>, i32 -> vector<4x256xf32>
    %c2_i32_14 = arith.constant 2 : i32
    %68 = vector.broadcast %c2_i32_14 : i32 to vector<1x256xi32>
    %69 = arith.cmpi sge, %3, %68 : vector<1x256xi32>
    %70 = arith.maximumf %66, %67 : vector<4x256xf32>
    %71 = vector.shape_cast %69 : vector<1x256xi1> to vector<1x256xi1>
    %72 = vector.broadcast %71 : vector<1x256xi1> to vector<4x256xi1>
    %73 = arith.select %72, %70, %66 : vector<4x256xi1>, vector<4x256xf32>
    %c4_i32 = arith.constant 4 : i32
    %74 = tpu.dynamic_rotate %73 by %c4_i32 dim 1 : vector<4x256xf32>, i32 -> vector<4x256xf32>
    %c4_i32_15 = arith.constant 4 : i32
    %75 = vector.broadcast %c4_i32_15 : i32 to vector<1x256xi32>
    %76 = arith.cmpi sge, %3, %75 : vector<1x256xi32>
    %77 = arith.maximumf %73, %74 : vector<4x256xf32>
    %78 = vector.shape_cast %76 : vector<1x256xi1> to vector<1x256xi1>
    %79 = vector.broadcast %78 : vector<1x256xi1> to vector<4x256xi1>
    %80 = arith.select %79, %77, %73 : vector<4x256xi1>, vector<4x256xf32>
    %c8_i32 = arith.constant 8 : i32
    %81 = tpu.dynamic_rotate %80 by %c8_i32 dim 1 : vector<4x256xf32>, i32 -> vector<4x256xf32>
    %c8_i32_16 = arith.constant 8 : i32
    %82 = vector.broadcast %c8_i32_16 : i32 to vector<1x256xi32>
    %83 = arith.cmpi sge, %3, %82 : vector<1x256xi32>
    %84 = arith.maximumf %80, %81 : vector<4x256xf32>
    %85 = vector.shape_cast %83 : vector<1x256xi1> to vector<1x256xi1>
    %86 = vector.broadcast %85 : vector<1x256xi1> to vector<4x256xi1>
    %87 = arith.select %86, %84, %80 : vector<4x256xi1>, vector<4x256xf32>
    %c255_i32 = arith.constant 255 : i32
    %88 = tpu.dynamic_rotate %1 by %c255_i32 dim 1 : vector<4x256xf32>, i32 -> vector<4x256xf32>
    %c15_i32 = arith.constant 15 : i32
    %89 = vector.broadcast %c15_i32 : i32 to vector<1x256xi32>
    %90 = arith.cmpi slt, %3, %89 : vector<1x256xi32>
    %91 = arith.maximumf %1, %88 : vector<4x256xf32>
    %92 = vector.shape_cast %90 : vector<1x256xi1> to vector<1x256xi1>
    %93 = vector.broadcast %92 : vector<1x256xi1> to vector<4x256xi1>
    %94 = arith.select %93, %91, %1 : vector<4x256xi1>, vector<4x256xf32>
    %c254_i32 = arith.constant 254 : i32
    %95 = tpu.dynamic_rotate %94 by %c254_i32 dim 1 : vector<4x256xf32>, i32 -> vector<4x256xf32>
    %c14_i32 = arith.constant 14 : i32
    %96 = vector.broadcast %c14_i32 : i32 to vector<1x256xi32>
    %97 = arith.cmpi slt, %3, %96 : vector<1x256xi32>
    %98 = arith.maximumf %94, %95 : vector<4x256xf32>
    %99 = vector.shape_cast %97 : vector<1x256xi1> to vector<1x256xi1>
    %100 = vector.broadcast %99 : vector<1x256xi1> to vector<4x256xi1>
    %101 = arith.select %100, %98, %94 : vector<4x256xi1>, vector<4x256xf32>
    %c252_i32 = arith.constant 252 : i32
    %102 = tpu.dynamic_rotate %101 by %c252_i32 dim 1 : vector<4x256xf32>, i32 -> vector<4x256xf32>
    %c12_i32 = arith.constant 12 : i32
    %103 = vector.broadcast %c12_i32 : i32 to vector<1x256xi32>
    %104 = arith.cmpi slt, %3, %103 : vector<1x256xi32>
    %105 = arith.maximumf %101, %102 : vector<4x256xf32>
    %106 = vector.shape_cast %104 : vector<1x256xi1> to vector<1x256xi1>
    %107 = vector.broadcast %106 : vector<1x256xi1> to vector<4x256xi1>
    %108 = arith.select %107, %105, %101 : vector<4x256xi1>, vector<4x256xf32>
    %c248_i32 = arith.constant 248 : i32
    %109 = tpu.dynamic_rotate %108 by %c248_i32 dim 1 : vector<4x256xf32>, i32 -> vector<4x256xf32>
    %c8_i32_17 = arith.constant 8 : i32
    %110 = vector.broadcast %c8_i32_17 : i32 to vector<1x256xi32>
    %111 = arith.cmpi slt, %3, %110 : vector<1x256xi32>
    %112 = arith.maximumf %108, %109 : vector<4x256xf32>
    %113 = vector.shape_cast %111 : vector<1x256xi1> to vector<1x256xi1>
    %114 = vector.broadcast %113 : vector<1x256xi1> to vector<4x256xi1>
    %115 = arith.select %114, %112, %108 : vector<4x256xi1>, vector<4x256xf32>
    %c0_18 = arith.constant 0 : index
    %c0_19 = arith.constant 0 : index
    %c0_20 = arith.constant 0 : index
    %116 = vector.load %arg2[%c0_18, %c0_19, %c0_20] : memref<5x4x4xf32, #tpu.memory_space<vmem>>, vector<1x4x4xf32>
    %117 = vector.shape_cast %116 : vector<1x4x4xf32> to vector<4x4xf32>
    %cst = arith.constant dense<0.000000e+00> : vector<4x256xf32>
    %118 = tpu.matmul %117, %1, %cst {dimension_numbers = #tpu.dot_dimension_numbers<[1], [0], [0], [1], [0, 0, 1, 1], [], []>} : vector<4x4xf32>, vector<4x256xf32>, vector<4x256xf32> -> vector<4x256xf32>
    %c1 = arith.constant 1 : index
    %c0_21 = arith.constant 0 : index
    %c0_22 = arith.constant 0 : index
    %119 = vector.load %arg2[%c1, %c0_21, %c0_22] : memref<5x4x4xf32, #tpu.memory_space<vmem>>, vector<1x4x4xf32>
    %120 = vector.shape_cast %119 : vector<1x4x4xf32> to vector<4x4xf32>
    %cst_23 = arith.constant dense<0.000000e+00> : vector<4x256xf32>
    %121 = tpu.matmul %120, %31, %cst_23 {dimension_numbers = #tpu.dot_dimension_numbers<[1], [0], [0], [1], [0, 0, 1, 1], [], []>} : vector<4x4xf32>, vector<4x256xf32>, vector<4x256xf32> -> vector<4x256xf32>
    %122 = arith.addf %118, %121 : vector<4x256xf32>
    %c2 = arith.constant 2 : index
    %c0_24 = arith.constant 0 : index
    %c0_25 = arith.constant 0 : index
    %123 = vector.load %arg2[%c2, %c0_24, %c0_25] : memref<5x4x4xf32, #tpu.memory_space<vmem>>, vector<1x4x4xf32>
    %124 = vector.shape_cast %123 : vector<1x4x4xf32> to vector<4x4xf32>
    %cst_26 = arith.constant dense<0.000000e+00> : vector<4x256xf32>
    %125 = tpu.matmul %124, %59, %cst_26 {dimension_numbers = #tpu.dot_dimension_numbers<[1], [0], [0], [1], [0, 0, 1, 1], [], []>} : vector<4x4xf32>, vector<4x256xf32>, vector<4x256xf32> -> vector<4x256xf32>
    %126 = arith.addf %122, %125 : vector<4x256xf32>
    %c3 = arith.constant 3 : index
    %c0_27 = arith.constant 0 : index
    %c0_28 = arith.constant 0 : index
    %127 = vector.load %arg2[%c3, %c0_27, %c0_28] : memref<5x4x4xf32, #tpu.memory_space<vmem>>, vector<1x4x4xf32>
    %128 = vector.shape_cast %127 : vector<1x4x4xf32> to vector<4x4xf32>
    %cst_29 = arith.constant dense<0.000000e+00> : vector<4x256xf32>
    %129 = tpu.matmul %128, %87, %cst_29 {dimension_numbers = #tpu.dot_dimension_numbers<[1], [0], [0], [1], [0, 0, 1, 1], [], []>} : vector<4x4xf32>, vector<4x256xf32>, vector<4x256xf32> -> vector<4x256xf32>
    %130 = arith.addf %126, %129 : vector<4x256xf32>
    %c4 = arith.constant 4 : index
    %c0_30 = arith.constant 0 : index
    %c0_31 = arith.constant 0 : index
    %131 = vector.load %arg2[%c4, %c0_30, %c0_31] : memref<5x4x4xf32, #tpu.memory_space<vmem>>, vector<1x4x4xf32>
    %132 = vector.shape_cast %131 : vector<1x4x4xf32> to vector<4x4xf32>
    %cst_32 = arith.constant dense<0.000000e+00> : vector<4x256xf32>
    %133 = tpu.matmul %132, %115, %cst_32 {dimension_numbers = #tpu.dot_dimension_numbers<[1], [0], [0], [1], [0, 0, 1, 1], [], []>} : vector<4x4xf32>, vector<4x256xf32>, vector<4x256xf32> -> vector<4x256xf32>
    %134 = arith.addf %130, %133 : vector<4x256xf32>
    %c0_33 = arith.constant 0 : index
    %c0_34 = arith.constant 0 : index
    %135 = vector.load %arg3[%c0_33, %c0_34] : memref<4x1xf32, #tpu.memory_space<vmem>>, vector<4x1xf32>
    %136 = vector.broadcast %135 : vector<4x1xf32> to vector<4x256xf32>
    %137 = arith.addf %134, %136 : vector<4x256xf32>
    %c0_35 = arith.constant 0 : index
    %c0_36 = arith.constant 0 : index
    %c0_37 = arith.constant 0 : index
    %138 = vector.load %arg5[%c0_35, %c0_36, %c0_37] : memref<1x4x256xf32, #tpu.memory_space<vmem>>, vector<1x4x256xf32>
    %139 = vector.shape_cast %138 : vector<1x4x256xf32> to vector<4x256xf32>
    %140 = vector.shape_cast %137 : vector<4x256xf32> to vector<1x4x256xf32>
    tpu.vector_store %arg5[%c0_35, %c0_36, %c0_37], %140 {strides = array<i32>} : memref<1x4x256xf32, #tpu.memory_space<vmem>>, vector<1x4x256xf32>,
    return
  }
  func.func @transform_0(%arg0: i32) -> (i32, i32, i32) {
    %c0_i32 = arith.constant 0 : i32
    %c0_i32_0 = arith.constant 0 : i32
    %c0_i32_1 = arith.constant 0 : i32
    return %arg0, %c0_i32, %c0_i32_0 : i32, i32, i32
  }
  func.func @transform_1(%arg0: i32) -> (i32, i32, i32) {
    %c0_i32 = arith.constant 0 : i32
    %c0_i32_0 = arith.constant 0 : i32
    %c0_i32_1 = arith.constant 0 : i32
    %c0_i32_2 = arith.constant 0 : i32
    return %c0_i32, %c0_i32_0, %c0_i32_1 : i32, i32, i32
  }
  func.func @transform_2(%arg0: i32) -> (i32, i32) {
    %c0_i32 = arith.constant 0 : i32
    %c0_i32_0 = arith.constant 0 : i32
    %c0_i32_1 = arith.constant 0 : i32
    return %c0_i32, %c0_i32_0 : i32, i32
  }
  func.func @transform_3(%arg0: i32) -> (i32, i32) {
    %c0_i32 = arith.constant 0 : i32
    %c0_i32_0 = arith.constant 0 : i32
    %c0_i32_1 = arith.constant 0 : i32
    return %c0_i32, %c0_i32_0 : i32, i32
  }
  func.func @transform_4(%arg0: i32) -> (i32, i32, i32) {
    %c0_i32 = arith.constant 0 : i32
    %c0_i32_0 = arith.constant 0 : i32
    %c0_i32_1 = arith.constant 0 : i32
    return %arg0, %c0_i32, %c0_i32_0 : i32, i32, i32
  }
}

</mosaic_0001>

<bundles_post_ra>
// kernel: tpu_custom_call.1
= control target key start
LH: loop header
LB: loop body
LE: loop exit
PB: predicated region body
PF: predicated region fallthrough
CT: control target
= control target key end

     0   :  { %9 = vsyncpa [#allocation3], 0  ;;  %s1524_s0 = inlined_call_operand.vmem [shape: f32[2,4,256], index: 0, kind: input, shape index: {}]   ;;  %s1525_s1 = inlined_call_operand.vmem [shape: f32[5,4,4], index: 1, kind: input, shape index: {}]   ;;  %s1526_s2 = inlined_call_operand.vmem [shape: f32[4,1], index: 2, kind: input, shape index: {}]   ;;  %s1527_s3 = inlined_call_operand.vmem [shape: s32[1,256], index: 3, kind: input, shape index: {}]   ;;  %s1528_s4 = inlined_call_operand.hbm [shape: f32[2,4,256], index: 4, kind: output, shape index: {}]  }
   0x1   :  { %11 = vsyncpa [#allocation3 + $0x1], 0  ;;  %s1225_s15 = smov 0   ;;  %s1227_s16 = smov 0  }
   0x2   :  { %s1229_s17 = smov 0   ;;  %s1231_s18 = smov 0  }
   0x3 LB: > { %s1246_s19 = sadd.s32 4294967295, %s1182_s18   ;;  %s1033_s20 = sadd.s32 4294967294, %s1182_s18   ;;  %s1182_s18 = sphi %s1231_s18, %s1534_s18   ;;  %s1178_s17 = sphi %s1229_s17, %s1533_s17   ;;  %s1174_s16 = sphi %s1227_s16, %s1532_s16   ;;  %s1170_s15 = sphi %s1225_s15, %s1531_s15  }
   0x4   : > { %s1250_s21 = sadd.s32 1, %s1182_s18   ;;  %s113_s22 = sadd.s32 1, %s1178_s17 }
   0x5   : > { %s110_s23 = ssub.s32 %s1182_s18, %s1250_s21  ;;  %p123_p0 = scmp.ne.s32.totalorder %s1178_s17, %s1174_s16 }
   0x6   : > { %p111_p1 = scmp.eq.s32.totalorder %s110_s23, 0  ;;  %p124_p2 = scmp.eq.s32.totalorder %s1246_s19, 1 }
   0x7   : > { %p129_p3 = scmp.ne.s32.totalorder %s1174_s16, %s1170_s15  ;;  %p130_p4 = scmp.eq.s32.totalorder %s1033_s20, 1 }
   0x8   : > { %s1261_s24 = scalar_select %p111_p1, %s1178_s17, %s113_s22  }
   0x9   : > { %p1263_p5 = por %p124_p2, %p123_p0  ;;  %p1267_p6 = por %p130_p4, %p129_p3 }
   0xa   : > { %p1036_p7 = scmp.ge.s32.totalorder %s1182_s18, 1  ;;  %p165_p8 = scmp.lt.s32.totalorder %s1182_s18, 3 }
   0xc   : > { %p166_p9 = pnand %p1036_p7, %p165_p8 }
   0xd   : > { %p191_p10 = scmp.lt.s32.totalorder (!%p166_p9), %s1246_s19, 1  ;;  %s1185_s6 = smov (!%p166_p9), 127  }
   0xe   : > { %169 = sbr.rel (%p166_p9) target bundleno = 728 (0x2d8), region = 36  ;;  %s1186_s7 = smov (!%p166_p9), 1  }
   0xf   : > { %s1187_s8 = smov (!%p166_p9), 16   ;;  %s1188_s9 = smov (!%p166_p9), 112  }
  0x10   : > { %s1189_s12 = smov (!%p166_p9), 2   ;;  %s1190_s13 = smov (!%p166_p9), 126  }
  0x11   : > { %s1191_s14 = smov (!%p166_p9), 32   ;;  %s1192_s20 = smov (!%p166_p9), 96  }
  0x12   : > { %s1193_s22 = smov (!%p166_p9), 4   ;;  %s1194_s23 = smov (!%p166_p9), 124  }
  0x13   : > { %v1184_v0 = vmov 0   ;;  %s192_s27 = scalar_select %p191_p10, %s1246_s19, 1  ;;  %v197_v3 = vlaneseq  ;;  %v1296_v4 = vld [vmem:[%s1527_s3] sm:$0x3] }
  0x14   : > { %1120 = vset.pattern.permute.xlu0 %v1184_v0  ;;  %vm342_vm0 = vcmp.ge.s32.totalorder %v1296_v4, 1  ;;  %vm440_vm1 = vcmp.lt.s32.totalorder %v1296_v4, 15  ;;  %vm371_vm12 = vcmp.ge.s32.totalorder %v1296_v4, 2  ;;  %vm469_vm13 = vcmp.lt.s32.totalorder %v1296_v4, 14  ;;  %s1197_s30 = smov 8  }
  0x15   : > { %s1064_s28 = sshll.u32 %s192_s27, 3  ;;  %v350_v5 = vshrl.u32 %v197_v3, 7  ;;  %v1299_v6 = vand.u32 127, %v197_v3  ;;  %v348_v10 = vsel %vm342_vm0, 1, %v1184_v0  ;;  %v446_v16 = vsel %vm440_vm1, 1, %v1184_v0  ;;  %s1196_s27 = smov 64  }
  0x16   : > { %s195_s5 = scalar_lea.vmem %s1524_s0, %s1064_s28  ;;  %v374_v50 = vsel %vm371_vm12, 1, %v1184_v0  ;;  %v472_v53 = vsel %vm469_vm13, 1, %v1184_v0 }
  0x17   : > { %v1279_v1 = vld [vmem:[%s195_s5] sm:$0xff]  ;;  %v1301_v7 = vsub.s32 0, %v350_v5  ;;  %v1304_v11 = vsub.s32 1, %v350_v5  ;;  %vm437_vm2 = vcmp.lt.s32.totalorder %v1299_v6, 127  ;;  %vm339_vm3 = vcmp.lt.s32.totalorder %v1299_v6, 1  ;;  %s1198_s5 = smov 120  }
  0x18   : > { %433 = vrot.lane.b32.xlu1 %v1279_v1, %s1185_s6  ;;  %335 = vrot.lane.b32.xlu0 %v1279_v1, %s1186_s7  ;;  %v1285_v2 = vcombine.high %v1279_v1, %v1279_v1  ;;  %vm208_vm4 = vcmp.lt.s32.totalorder %v1299_v6, 16  ;;  %vm274_vm7 = vcmp.lt.s32.totalorder %v1299_v6, 112  ;;  %vm211_vm10 = vcmp.ge.s32.totalorder %v1299_v6, 16 }
  0x19   : > { %v352_v12 = vrot.slane %v348_v10, %v1301_v7  ;;  %v356_v15 = vrot.slane %v348_v10, %v1304_v11  ;;  %v450_v23 = vrot.slane %v446_v16, %v1301_v7  ;;  %v454_v30 = vrot.slane %v446_v16, %v1304_v11 }
  0x1a   : > { %v1324_v43 = vadd.s32 128, %v1299_v6  ;;  %v378_v51 = vrot.slane %v374_v50, %v1301_v7  ;;  %v382_v52 = vrot.slane %v374_v50, %v1304_v11  ;;  %vm368_vm14 = vcmp.lt.s32.totalorder %v1299_v6, 2 }
  0x1b   : > { %vm357_vm5 = vcmp.eq.s32.totalorder %v352_v12, 1  ;;  %vm358_vm6 = vcmp.eq.s32.totalorder %v356_v15, 1  ;;  %vm455_vm8 = vcmp.eq.s32.totalorder %v450_v23, 1  ;;  %vm456_vm9 = vcmp.eq.s32.totalorder %v454_v30, 1 }
  0x1c   : > { %435 = vrot.lane.b32.xlu1 %v1285_v2, %s1185_s6  ;;  %337 = vrot.lane.b32.xlu0 %v1285_v2, %s1186_s7  ;;  %vm278_vm11 = vcmp.lt.s32.totalorder %v1324_v43, 240  ;;  %vm383_vm15 = vcmp.eq.s32.totalorder %v378_v51, 1  ;;  %v480_v56 = vrot.slane %v472_v53, %v1304_v11  ;;  %vm384_vm0 = vcmp.eq.s32.totalorder %v382_v52, 1 }
  0x1d   : > { %v476_v59 = vrot.slane %v472_v53, %v1301_v7  ;;  %vm466_vm1 = vcmp.lt.s32.totalorder %v1299_v6, 126  ;;  %vm391_vm12 = vcmp.lt.s32.totalorder %v1299_v6, 4 }
  0x20   : > { %206 = vrot.lane.b32.xlu1 %v1285_v2, %s1187_s8  ;;  %204 = vrot.lane.b32.xlu0 %v1279_v1, %s1187_s8 }
  0x24   : > { %272 = vrot.lane.b32.xlu1 %v1285_v2, %s1188_s9  ;;  %270 = vrot.lane.b32.xlu0 %v1279_v1, %s1188_s9  ;;  %s1199_s9 = smov [#allocation2]  }
  0x25   : > { %s1126_s10 = sshll.u32 %s1199_s9, 4  ;;  %s1127_s10 = int_to_ptr.vmem [resolvable:$false] %s1126_s10 }
  0x8a   : > { %v434_v8 = vpop.permute.xlu1 %433  ;;  %v336_v9 = vpop.permute.xlu0 %335 }
  0x8e   : > { %v436_v13 = vpop.permute.xlu1 %435  ;;  %v338_v14 = vpop.permute.xlu0 %337 }
  0x8f   : > { %v438_v17 = vsel %vm437_vm2, %v434_v8, %v436_v13  ;;  %v439_v18 = vsel %vm437_vm2, %v436_v13, %v434_v8  ;;  %v340_v19 = vsel %vm339_vm3, %v336_v9, %v338_v14  ;;  %v341_v20 = vsel %vm339_vm3, %v338_v14, %v336_v9 }
  0x90   : > { %v443_v21 = vcombine.low %v438_v17, %v439_v18  ;;  %v345_v22 = vcombine.low %v341_v20, %v340_v19  ;;  %vm482_vm2 = vcmp.eq.s32.totalorder %v480_v56, 1  ;;  %vm481_vm3 = vcmp.eq.s32.totalorder %v476_v59, 1 }
  0x91   : > { %v1195_v20 = vmov 0.0  }
  0x92   : > { %v445_v24 = vmax.f32 %v1279_v1, %v443_v21  ;;  %v347_v25 = vmax.f32 %v1279_v1, %v345_v22  ;;  %v207_v26 = vpop.permute.xlu1 %206  ;;  %v205_v27 = vpop.permute.xlu0 %204  ;;  %609 = vmatprep.mubr.f32.mxu0 %v1195_v20  ;;  %687 = vmatprep.mubr.f32.mxu1 %v1195_v20 }
  0x93   : > { %v209_v28 = vsel %vm208_vm4, %v205_v27, %v207_v26  ;;  %v210_v29 = vsel %vm208_vm4, %v207_v26, %v205_v27  ;;  %vm538_vm4 = vcmask 1043456  }
  0x94   : > { %v362_v31 = vsel %vm357_vm5, %v347_v25, %v1279_v1  ;;  %v215_v32 = vcombine.low %v210_v29, %v209_v28  ;;  %v360_v33 = vcombine.high %v347_v25, %v347_v25  ;;  %v458_v38 = vcombine.high %v445_v24, %v445_v24  ;;  %1044 = vmatprep.subr.msk.mxu1 %vm538_vm4, %v1285_v2  ;;  %v531_v28 = vld [vmem:[%s1525_s1] sm:$0xf] }
  0x95   : > { %364 = vrot.lane.b32.xlu0 %v362_v31, %s1189_s12  ;;  %v460_v41 = vsel %vm455_vm8, %v445_v24, %v1279_v1  ;;  %vm231_vm5 = vcmp.lt.s32.totalorder %v1299_v6, 32  ;;  %1045 = vmatpush1.msk.msra.mxu1 %vm538_vm4, %v1279_v1  ;;  %vm301_vm8 = vcmp.lt.s32.totalorder %v1324_v43, 224 }
  0x96   : > { %v217_v34 = vmax.f32 %v1279_v1, %v215_v32  ;;  %v363_v35 = vsel %vm358_vm6, %v360_v33, %v1285_v2  ;;  %v273_v36 = vpop.permute.xlu1 %272  ;;  %v271_v37 = vpop.permute.xlu0 %270  ;;  %v461_v44 = vsel %vm456_vm9, %v458_v38, %v1285_v2  ;;  %vm234_vm6 = vcmp.ge.s32.totalorder %v1299_v6, 32 }
  0x97   : > { %366 = vrot.lane.b32.xlu1 %v363_v35, %s1189_s12  ;;  %v275_v39 = vsel %vm274_vm7, %v271_v37, %v273_v36  ;;  %v276_v40 = vsel %vm274_vm7, %v273_v36, %v271_v37  ;;  %vm297_vm7 = vcmp.lt.s32.totalorder %v1299_v6, 96  ;;  %vm394_vm9 = vcmp.ge.s32.totalorder %v1296_v4, 4 }
  0x98   : > { %v281_v42 = vcombine.low %v275_v39, %v276_v40  ;;  %v1328_v45 = vsel %vm211_vm10, %v217_v34, %v1279_v1  ;;  %v223_v47 = vcombine.high %v217_v34, %v217_v34  ;;  %vm534_vm10 = vcmask 31744  }
  0x99   : > { %462 = vrot.lane.b32.xlu0 %v460_v41, %s1190_s13  ;;  %v397_v29 = vsel %vm394_vm9, 1, %v1184_v0  ;;  %1046 = vmatmul.mubr.msk.f32.vlgmr.msra.gmra.mxu1 %vm534_vm10, %v531_v28 }
  0x9a   : > { %v1331_v46 = vmax.f32 %v1279_v1, %v281_v42  ;;  %853 = vmatprep.mubr.f32.mxu1 %v1195_v20  ;;  %v401_v30 = vrot.slane %v397_v29, %v1301_v7 }
  0x9b   : > { %464 = vrot.lane.b32.xlu1 %v461_v44, %s1190_s13 }
  0x9c   : > { %v289_v48 = vcombine.high %v1331_v46, %v1331_v46  ;;  %vm406_vm13 = vcmp.eq.s32.totalorder %v401_v30, 1 }
  0x9d   : > { %227 = vrot.lane.b32.xlu0 %v1328_v45, %s1191_s14 }
  0x9e   : > { %v1338_v49 = vsel %vm278_vm11, %v289_v48, %v1285_v2  ;;  %vm492_vm11 = vcmp.lt.s32.totalorder %v1296_v4, 12 }
  0x9f   : > { %229 = vrot.lane.b32.xlu1 %v223_v47, %s1191_s14  ;;  %v495_v32 = vsel %vm492_vm11, 1, %v1184_v0 }
  0xa0   : > { %v503_v37 = vrot.slane %v495_v32, %v1304_v11  ;;  %v499_v38 = vrot.slane %v495_v32, %v1301_v7 }
  0xa1   : > { %293 = vrot.lane.b32.xlu0 %v1331_v46, %s1192_s20 }
  0xa3   : > { %295 = vrot.lane.b32.xlu1 %v1338_v49, %s1192_s20 }
 0x107   : > { %v365_v54 = vpop.permute.xlu0 %364 }
 0x109   : > { %v367_v55 = vpop.permute.xlu1 %366 }
 0x10a   : > { %v369_v57 = vsel %vm368_vm14, %v365_v54, %v367_v55  ;;  %v370_v58 = vsel %vm368_vm14, %v367_v55, %v365_v54 }
 0x10b   : > { %v372_v60 = vmax.f32 %v362_v31, %v370_v58  ;;  %v373_v61 = vmax.f32 %v363_v35, %v369_v57  ;;  %v463_v62 = vpop.permute.xlu0 %462  ;;  %v946_v58 = vld [vmem:[%s1526_s2] sm:$0xf] }
 0x10d   : > { %v465_v63 = vpop.permute.xlu1 %464  ;;  %v1352_v3 = vsel %vm383_vm15, %v372_v60, %v362_v31  ;;  %v1354_v5 = vsel %vm384_vm0, %v373_v61, %v363_v35  ;;  %v405_v31 = vrot.slane %v397_v29, %v1304_v11  ;;  %vm489_vm15 = vcmp.lt.s32.totalorder %v1299_v6, 124  ;;  %v1055_v29 = vld [vmem:[%s1525_s1 + $0x10] sm:$0xf] }
 0x10e   : > { %v467_v8 = vsel %vm466_vm1, %v463_v62, %v465_v63  ;;  %v468_v9 = vsel %vm466_vm1, %v465_v63, %v463_v62  ;;  %387 = vrot.lane.b32.xlu0 %v1352_v3, %s1193_s22  ;;  %389 = vrot.lane.b32.xlu1 %v1354_v5, %s1193_s22  ;;  %vm505_vm0 = vcmp.eq.s32.totalorder %v503_v37, 1  ;;  %vm504_vm1 = vcmp.eq.s32.totalorder %v499_v38, 1  ;;  %s188_s22 = sand.u32 1, %s1174_s16  }
 0x10f   : > { %v470_v10 = vmax.f32 %v460_v41, %v467_v8  ;;  %v471_v12 = vmax.f32 %v461_v44, %v468_v9  ;;  %v228_v13 = vpop.permute.xlu0 %227  ;;  %vm407_vm14 = vcmp.eq.s32.totalorder %v405_v31, 1  ;;  %v1040_v9 = vld [vmem:[%s1525_s1 + $0x4] sm:$0xf]  ;;  %s960_s7 = scalar_lea.sflag [#allocation3], %s188_s22 }
 0x111   : > { %v230_v14 = vpop.permute.xlu1 %229  ;;  %v1363_v15 = vsel %vm482_vm2, %v471_v12, %v461_v44  ;;  %v1365_v16 = vsel %vm481_vm3, %v470_v10, %v460_v41  ;;  %vm248_vm2 = vcmp.lt.s32.totalorder %v1299_v6, 64  ;;  %vm251_vm3 = vcmp.ge.s32.totalorder %v1299_v6, 64 }
 0x112   : > { %v232_v17 = vsel %vm231_vm5, %v228_v13, %v230_v14  ;;  %v233_v18 = vsel %vm231_vm5, %v230_v14, %v228_v13  ;;  %487 = vrot.lane.b32.xlu1 %v1363_v15, %s1194_s23  ;;  %485 = vrot.lane.b32.xlu0 %v1365_v16, %s1194_s23  ;;  %vm317_vm5 = vcmp.lt.s32.totalorder %v1324_v43, 192  ;;  %v1047_v43 = vld [vmem:[%s1525_s1 + $0x8] sm:$0xf]  ;;  %s1037_s23 = sshll.u32 %s188_s22, 3 }
 0x113   : > { %v236_v19 = vmax.f32 %v1328_v45, %v233_v18  ;;  %v1371_v2 = vmax.f32 %v223_v47, %v232_v17  ;;  %v294_v1 = vpop.permute.xlu0 %293  ;;  %s190_s28 = scalar_lea.vmem [#allocation2], %s1037_s23 }
 0x114   : > { %s974_s29 = sshll.u32 %s190_s28, 4  ;;  %s975_s29 = int_to_ptr.vmem [resolvable:$true] %s974_s29 }
 0x115   : > { %v296_v21 = vpop.permute.xlu1 %295  ;;  %v1377_v22 = vsel %vm234_vm6, %v236_v19, %v1328_v45  ;;  %vm417_vm6 = vcmp.ge.s32.totalorder %v1296_v4, 8  ;;  %s1122_s8 = scalar_lea.vmem %s975_s29, 128  ;;  %p1129_p0 = scmp.lt.s32.totalorder %s975_s29, %s1127_s10 }
 0x116   : > { %v298_v23 = vsel %vm297_vm7, %v294_v1, %v296_v21  ;;  %v299_v24 = vsel %vm297_vm7, %v296_v21, %v294_v1  ;;  %244 = vrot.lane.b32.xlu0 %v1377_v22, %s1196_s27  ;;  %246 = vrot.lane.b32.xlu1 %v1371_v2, %s1196_s27  ;;  %v420_v13 = vsel %vm417_vm6, 1, %v1184_v0  ;;  %vm515_vm7 = vcmp.lt.s32.totalorder %v1296_v4, 8  ;;  %p1123_p11 = scmp.ne.s32.totalorder %s975_s29, %s1122_s8 }
 0x117   : > { %v1383_v25 = vmax.f32 %v1331_v46, %v298_v23  ;;  %v303_v26 = vmax.f32 %v1338_v49, %v299_v24  ;;  %v424_v14 = vrot.slane %v420_v13, %v1301_v7 }
 0x118   : > { %p1124_p12 = pnand %p1123_p11, %p1263_p5 }
 0x119   : > { %v1387_v27 = vsel %vm301_vm8, %v303_v26, %v1338_v49  ;;  %vm414_vm8 = vcmp.lt.s32.totalorder %v1299_v6, 8  ;;  %vm429_vm11 = vcmp.eq.s32.totalorder %v424_v14, 1 }
 0x11a   : > { %312 = vrot.lane.b32.xlu1 %v1387_v27, %s1196_s27  ;;  %310 = vrot.lane.b32.xlu0 %v1383_v25, %s1196_s27  ;;  %s1065_s27 = sshll.u32 %s1246_s19, 7  ;;  %p1125_p13 = pneg %p1124_p12 }
 0x11b   : > { %s972_s6 = scalar_lea.hbm %s1528_s4, %s1065_s27  ;;  %s1128_s19 = scalar_lea.vmem %s1127_s10, 256 }
 0x11c   : > { %p1130_p1 = scmp.lt.s32.totalorder %s1128_s19, %s1122_s8 }
 0x11e   : > { %p1131_p2 = por %p1130_p1, %p1129_p0 }
 0x120   : > { %p1132_p3 = pnand %p1131_p2, %p1125_p13 }
 0x159   : > { %v689_v32 = vpop.f32.mrf.mxu1 }
 0x180   : > { %v390_v33 = vpop.permute.xlu1 %389  ;;  %v388_v34 = vpop.permute.xlu0 %387 }
 0x181   : > { %v392_v35 = vsel %vm391_vm12, %v388_v34, %v390_v33  ;;  %v393_v36 = vsel %vm391_vm12, %v390_v33, %v388_v34  ;;  %vm512_vm12 = vcmp.lt.s32.totalorder %v1299_v6, 120  ;;  %v691_v34 = vpop.f32.mrf.mxu1 }
 0x182   : > { %v395_v39 = vmax.f32 %v1352_v3, %v393_v36  ;;  %v396_v40 = vmax.f32 %v1354_v5, %v392_v35 }
 0x184   : > { %v488_v41 = vpop.permute.xlu1 %487  ;;  %v486_v42 = vpop.permute.xlu0 %485  ;;  %v1409_v44 = vsel %vm406_vm13, %v395_v39, %v1352_v3  ;;  %v1412_v45 = vsel %vm407_vm14, %v396_v40, %v1354_v5 }
 0x185   : > { %v490_v46 = vsel %vm489_vm15, %v486_v42, %v488_v41  ;;  %v491_v47 = vsel %vm489_vm15, %v488_v41, %v486_v42  ;;  %410 = vrot.lane.b32.xlu0 %v1409_v44, %s1197_s30  ;;  %412 = vrot.lane.b32.xlu1 %v1412_v45, %s1197_s30 }
 0x186   : > { %v493_v48 = vmax.f32 %v1365_v16, %v490_v46  ;;  %v494_v49 = vmax.f32 %v1363_v15, %v491_v47 }
 0x188   : > { %v247_v50 = vpop.permute.xlu1 %246  ;;  %v245_v51 = vpop.permute.xlu0 %244  ;;  %v1420_v52 = vsel %vm505_vm0, %v494_v49, %v1363_v15  ;;  %v1423_v53 = vsel %vm504_vm1, %v493_v48, %v1365_v16  ;;  %v428_v15 = vrot.slane %v420_v13, %v1304_v11  ;;  %v518_v16 = vsel %vm515_vm7, 1, %v1184_v0 }
 0x189   : > { %v249_v54 = vsel %vm248_vm2, %v245_v51, %v247_v50  ;;  %v250_v55 = vsel %vm248_vm2, %v247_v50, %v245_v51  ;;  %510 = vrot.lane.b32.xlu1 %v1420_v52, %s1198_s5  ;;  %508 = vrot.lane.b32.xlu0 %v1423_v53, %s1198_s5  ;;  %v522_v1 = vrot.slane %v518_v16, %v1301_v7 }
 0x18a   : > { %v253_v56 = vmax.f32 %v1377_v22, %v250_v55  ;;  %v254_v57 = vmax.f32 %v1371_v2, %v249_v54  ;;  %vm430_vm9 = vcmp.eq.s32.totalorder %v428_v15, 1 }
 0x18b   : > { %vm527_vm14 = vcmp.eq.s32.totalorder %v522_v1, 1 }
 0x18c   : > { %v313_v59 = vpop.permute.xlu1 %312  ;;  %v311_v60 = vpop.permute.xlu0 %310  ;;  %v259_v61 = vsel %vm251_vm3, %v253_v56, %v1377_v22 }
 0x18d   : > { %v314_v62 = vsel %vm248_vm2, %v311_v60, %v313_v59  ;;  %v315_v63 = vsel %vm248_vm2, %v313_v59, %v311_v60  ;;  %v263_v3 = vmax.f32 %v259_v61, %v254_v57  ;;  %949 = vperm.xlu0 %1120, %v946_v58  }
 0x18e   : > { %v318_v5 = vmax.f32 %v1383_v25, %v314_v62  ;;  %v319_v8 = vmax.f32 %v1387_v27, %v315_v63  ;;  %v1051_v25 = vld [vmem:[%s1525_s1 + $0xc] sm:$0xf] }
 0x18f   : > { %1041 = vmatprep.subr.msk.mxu0 %vm538_vm4, %v263_v3 }
 0x190   : > { %1042 = vmatpush1.msk.msra.mxu0 %vm538_vm4, %v259_v61  ;;  %v325_v10 = vsel %vm317_vm5, %v319_v8, %v1387_v27 }
 0x191   : > { %v328_v12 = vmax.f32 %v318_v5, %v325_v10  ;;  %1048 = vmatprep.subr.msk.mxu0 %vm538_vm4, %v325_v10  ;;  %1043 = vmatmul.mubr.msk.f32.vlgmr.msra.gmra.mxu0 %vm534_vm10, %v1040_v9 }
 0x192   : > { %769 = vmatprep.mubr.f32.mxu0 %v1195_v20 }
 0x193   : > { %1049 = vmatpush1.msk.msra.mxu0 %vm538_vm4, %v328_v12 }
 0x195   : > { %1050 = vmatmul.mubr.msk.f32.vlgmr.msra.gmra.mxu0 %vm534_vm10, %v1047_v43 }
 0x196   : > { %937 = vmatprep.mubr.f32.mxu0 %v1195_v20  ;;  %v526_v20 = vrot.slane %v518_v16, %v1304_v11 }
 0x198   : > { %vm528_vm13 = vcmp.eq.s32.totalorder %v526_v20, 1 }
 0x1f7   : > { %v413_v17 = vpop.permute.xlu1 %412  ;;  %v411_v18 = vpop.permute.xlu0 %410 }
 0x1f8   : > { %v415_v19 = vsel %vm414_vm8, %v411_v18, %v413_v17  ;;  %v416_v2 = vsel %vm414_vm8, %v413_v17, %v411_v18 }
 0x1f9   : > { %v418_v4 = vmax.f32 %v1409_v44, %v416_v2  ;;  %v419_v21 = vmax.f32 %v1412_v45, %v415_v19 }
 0x1fb   : > { %v511_v22 = vpop.permute.xlu1 %510  ;;  %v509_v23 = vpop.permute.xlu0 %508  ;;  %v432_v0 = vsel %vm430_vm9, %v419_v21, %v1412_v45  ;;  %v431_v24 = vsel %vm429_vm11, %v418_v4, %v1409_v44 }
 0x1fc   : > { %v513_v26 = vsel %vm512_vm12, %v509_v23, %v511_v22  ;;  %v514_v7 = vsel %vm512_vm12, %v511_v22, %v509_v23  ;;  %1052 = vmatprep.subr.msk.mxu1 %vm538_vm4, %v432_v0 }
 0x1fd   : > { %v516_v11 = vmax.f32 %v1423_v53, %v513_v26  ;;  %v517_v6 = vmax.f32 %v1420_v52, %v514_v7  ;;  %1053 = vmatpush1.msk.msra.mxu1 %vm538_vm4, %v431_v24 }
 0x1fe   : > { %1054 = vmatmul.mubr.msk.f32.vlgmr.msra.gmra.mxu1 %vm534_vm10, %v1051_v25 }
 0x1ff   : > { %v530_v27 = vsel %vm528_vm13, %v517_v6, %v1420_v52  ;;  %v529_v28 = vsel %vm527_vm14, %v516_v11, %v1423_v53 }
 0x200   : > { %1056 = vmatprep.subr.msk.mxu0 %vm538_vm4, %v530_v27 }
 0x201   : > { %1057 = vmatpush1.msk.msra.mxu0 %vm538_vm4, %v529_v28 }
 0x202   : > { %1058 = vmatmul.mubr.msk.f32.vlgmr.msra.gmra.mxu0 %vm534_vm10, %v1055_v29 }
 0x208   : > { %v950_v48 = vpop.permute.xlu0 %949 }
 0x251   : > { %v611_v30 = vpop.f32.mrf.mxu0 }
 0x252   : > { %v690_v33 = vadd.f32 %v689_v32, %v611_v30 }
 0x253   : > { %v613_v31 = vpop.f32.mrf.mxu0 }
 0x254   : > { %v692_v36 = vadd.f32 %v691_v34, %v613_v31 }
 0x255   : > { %v771_v35 = vpop.f32.mrf.mxu0 }
 0x256   : > { %v776_v37 = vadd.f32 %v771_v35, %v690_v33 }
 0x257   : > { %v773_v38 = vpop.f32.mrf.mxu0 }
 0x258   : > { %v777_v41 = vadd.f32 %v773_v38, %v692_v36 }
 0x2be   : > { %v855_v39 = vpop.f32.mrf.mxu1 }
 0x2bf   : > { %v860_v42 = vadd.f32 %v855_v39, %v776_v37 }
 0x2c0   : > { %v857_v40 = vpop.f32.mrf.mxu1 }
 0x2c1   : > { %v861_v45 = vadd.f32 %v857_v40, %v777_v41 }
 0x2c2   : > { %v939_v44 = vpop.f32.mrf.mxu0 }
 0x2c3   : > { %v944_v46 = vadd.f32 %v939_v44, %v860_v42 }
 0x2c4   : > { %v941_v47 = vpop.f32.mrf.mxu0 }
 0x2c5   : > { %v945_v49 = vadd.f32 %v941_v47, %v861_v45  ;;  %v952_v50 = vadd.f32 %v950_v48, %v944_v46 }
 0x2c7   : > { %v953_v51 = vadd.f32 %v950_v48, %v945_v49 }
 0x2c9   : > { %v956_v52 = vcombine.low %v952_v50, %v953_v51 }
 0x2cb   : > { %958 = vst [vmem:[%s190_s28] sm:$0xff] %v956_v52 }
 0x2cc   : > { %1135 = shalt.err (!%p1132_p3)
}
 0x2cd   : > { %s1136_s11 = scalar_lea.hbm %s972_s6, 128  ;;  %s1140_s14 = scalar_lea.hbm %s1528_s4, 256 }
 0x2ce   : > { %p1137_p4 = scmp.ne.s32.totalorder %s972_s6, %s1136_s11  ;;  %p1141_p9 = scmp.lt.s32.totalorder %s972_s6, %s1528_s4 }
 0x2cf   : > { %p1142_p10 = scmp.lt.s32.totalorder %s1140_s14, %s1136_s11 }
 0x2d0   : > { %p1138_p7 = pnand %p1137_p4, %p1263_p5 }
 0x2d1   : > { %p1143_p11 = por %p1142_p10, %p1141_p9 }
 0x2d2   : > { %p1139_p8 = pneg %p1138_p7 }
 0x2d4   : > { %p1144_p12 = pnand %p1143_p11, %p1139_p8 }
 0x2d6   : > { %1147 = shalt.err (!%p1144_p12)
}
 0x2d7   : > { %1066 = dma.vmem_to_hbm [thread:$0]  (%p1263_p5), %s975_s29, 128, %s972_s6, %s960_s7  }
 0x2d8 PF: > { %p1072_p13 = scmp.ge.s32.totalorder %s1182_s18, 2  ;;  %s986_s23 = sand.u32 1, %s1170_s15  }
 0x2d9   : > { %s987_s27 = scalar_lea.sflag [#allocation3], %s986_s23 }
 0x2da   : > { %p1069_p0 = pnand %p1072_p13, %p1267_p6 }
 0x2dc   : > { %p1070_p1 = pneg %p1069_p0 }
 0x2de   : > { %1165 = dma.done.wait (%p1070_p1), %s987_s27, 128  }
 0x2df   : > { %1167 = vsyncadd (%p1070_p1), %s987_s27, 4294967168  ;;  %p14_p2 = scmp.ge.s32.totalorder %s1250_s21, 4   ;;  %s1531_s15 = smov %s1174_s16 }
 0x2e0   : > { %s1532_s16 = smov %s1178_s17  ;;  %s1533_s17 = smov %s1261_s24 }
 0x2e1   : > { %s1534_s18 = smov %s1250_s21  ;;  %16 = sbr.rel (!%p14_p2) target bundleno = 3 (0x3), region = 75 }
 0x2e6   :  { %992 = vsyncpa [#allocation3], 1 }
 0x2e7   :  { %994 = vsyncpa [#allocation3 + $0x1], 1 }

</bundles_post_ra>
